<compile_context>
chip_gen: v6e
topology: v6e:2x2x1
jax: 0.10.0
libtpu: 0.0.40
codegen_flags: <defaults>
</compile_context>

<pallas_src>
import functools

import jax
import jax.numpy as jnp
import numpy as np
from jax.experimental import pallas as pl
from jax.experimental.pallas import tpu as pltpu

H = 8
W = 8
P = H * W                 # 64 spatial positions
C_IN = 3
C_OUT = 8
FLAT = C_OUT * P          # 512
HIDDEN = 56
HIDDEN_PAD = 64           # pad hidden to a lane-friendly width
N_ACTIONS = 8
OUT_PAD = 128             # lane-dense output tile; sliced to 8 in the wrapper


def _round_up(n, m):
    return ((n + m - 1) // m) * m


def knight_dqn_kernel(wc_ref, bc_ref, x_ref, w1_ref, b1_ref, w2_ref, b2_ref, out_ref):
    # wc_ref : SMEM (C_OUT, C_IN)        conv1 weight (1x1 kernel squeezed), f32
    # bc_ref : SMEM (C_OUT,)             conv1 bias, f32
    # x_ref  : VMEM (C_IN, TB, P)        input batch tile, channel-major, f32
    # w1_ref : VMEM (FLAT, HIDDEN_PAD)   fn1 weight^T, zero-padded, bf16
    # b1_ref : VMEM (1, HIDDEN_PAD)      fn1 bias, zero-padded, f32
    # w2_ref : VMEM (HIDDEN_PAD, OUT_PAD) head weight^T, zero-padded, bf16
    # b2_ref : VMEM (1, OUT_PAD)         head bias, zero-padded, f32
    # out_ref: VMEM (TB, OUT_PAD)        f32
    x0 = x_ref[0]                        # (TB, P) f32
    x1 = x_ref[1]
    x2 = x_ref[2]

    # 1x1 conv + ReLU on the VPU, one (TB, P) plane per output channel.
    planes = []
    for c in range(C_OUT):
        p = bc_ref[c] + wc_ref[c, 0] * x0 + wc_ref[c, 1] * x1 + wc_ref[c, 2] * x2
        planes.append(jnp.maximum(p, 0.0))

    # Concatenate along lanes: column index = c*P + p  == torch flatten order.
    flat = jnp.concatenate(planes, axis=-1)              # (TB, FLAT) f32

    # Single fused K=512 matmul on the MXU (bf16 in, f32 accumulate).
    h = jnp.dot(flat.astype(jnp.bfloat16), w1_ref[...],
                preferred_element_type=jnp.float32)      # (TB, HIDDEN_PAD)
    h = jnp.maximum(h + b1_ref[...], 0.0)

    out = jnp.dot(h.astype(jnp.bfloat16), w2_ref[...],
                  preferred_element_type=jnp.float32) + b2_ref[...]
    out_ref[...] = out                                    # (TB, OUT_PAD) f32


def prepare_params(params):
    """One-time parameter preprocessing (layout / padding / dtype). Do NOT call per step."""
    wc, bc, w1, b1, w2, b2 = params
    wc = wc.astype(jnp.float32)                           # (C_OUT, C_IN)
    bc = bc.astype(jnp.float32)                           # (C_OUT,)

    # w1: (HIDDEN, FLAT) torch layout; w1.T rows are already in c*P+p order.
    w1p = jnp.pad(w1.T.astype(jnp.bfloat16),
                  ((0, 0), (0, HIDDEN_PAD - HIDDEN)))     # (FLAT, HIDDEN_PAD)
    b1p = jnp.pad(b1.astype(jnp.float32),
                  (0, HIDDEN_PAD - HIDDEN)).reshape(1, HIDDEN_PAD)

    w2p = jnp.pad(w2.T.astype(jnp.bfloat16),
                  ((0, HIDDEN_PAD - HIDDEN), (0, OUT_PAD - N_ACTIONS)))  # (HIDDEN_PAD, OUT_PAD)
    b2p = jnp.pad(b2.astype(jnp.float32),
                  (0, OUT_PAD - N_ACTIONS)).reshape(1, OUT_PAD)
    return (wc, bc, w1p, b1p, w2p, b2p)


def knight_dqn_forward(x, prepped):
    """x: (B, 3, H, W) float32 NCHW.  prepped: output of prepare_params.  Returns (B, 8) f32."""
    wc, bc, w1p, b1p, w2p, b2p = prepped
    B = x.shape[0]

    # Batch tile size: 8-row multiples for small B, 128/512 rows otherwise.
    if B >= 512:
        tb = 512
    elif B >= 128:
        tb = 128
    else:
        tb = _round_up(B, 8)
    b_pad = _round_up(B, tb)

    # Layout plumbing only: channel-major contiguous planes + batch padding.
    x_cm = jnp.transpose(x.reshape(B, C_IN, P).astype(jnp.float32), (1, 0, 2))  # (C_IN, B, P)
    if b_pad != B:
        x_cm = jnp.pad(x_cm, ((0, 0), (0, b_pad - B), (0, 0)))

    out_padded = pl.pallas_call(
        knight_dqn_kernel,
        out_shape=jax.ShapeDtypeStruct((b_pad, OUT_PAD), jnp.float32),
        grid=(b_pad // tb,),
        in_specs=[
            pl.BlockSpec(memory_space=pltpu.MemorySpace.SMEM),            # wc
            pl.BlockSpec(memory_space=pltpu.MemorySpace.SMEM),            # bc
            pl.BlockSpec((C_IN, tb, P), lambda i: (0, i, 0)),             # x tile
            pl.BlockSpec((FLAT, HIDDEN_PAD), lambda i: (0, 0)),           # w1p
            pl.BlockSpec((1, HIDDEN_PAD), lambda i: (0, 0)),              # b1p
            pl.BlockSpec((HIDDEN_PAD, OUT_PAD), lambda i: (0, 0)),        # w2p
            pl.BlockSpec((1, OUT_PAD), lambda i: (0, 0)),                 # b2p
        ],
        out_specs=pl.BlockSpec((tb, OUT_PAD), lambda i: (i, 0)),
        compiler_params=pltpu.CompilerParams(
            dimension_semantics=("parallel",)),
    )(wc, bc, x_cm, w1p, b1p, w2p, b2p)

    return out_padded[:B, :N_ACTIONS]


def reference_forward(x, params):
    """Pure-JAX f32 replica of the PyTorch forward (NCHW semantics)."""
    wc, bc, w1, b1, w2, b2 = params
    B = x.shape[0]
    conv = jnp.einsum("oc,bchw->bohw", wc, x) + bc[None, :, None, None]
    conv = jnp.maximum(conv, 0.0)
    flat = conv.reshape(B, -1)                    # channel-major flatten
    h1 = jnp.maximum(flat @ w1.T + b1, 0.0)
    return h1 @ w2.T + b2


def init_params(key):
    ks = jax.random.split(key, 6)
    lin_in = C_OUT * H * W
    wc = jax.random.normal(ks[0], (C_OUT, C_IN), jnp.float32) * 0.2
    bc = jax.random.normal(ks[1], (C_OUT,), jnp.float32) * 0.1
    w1 = jax.random.normal(ks[2], (HIDDEN, lin_in), jnp.float32) * 0.05
    b1 = jax.random.normal(ks[3], (HIDDEN,), jnp.float32) * 0.05
    w2 = jax.random.normal(ks[4], (N_ACTIONS, HIDDEN), jnp.float32) * 0.1
    b2 = jax.random.normal(ks[5], (N_ACTIONS,), jnp.float32) * 0.1
    return (wc, bc, w1, b1, w2, b2)


if __name__ == "__main__":
    key = jax.random.PRNGKey(0)
    pkey, xkey = jax.random.split(key)
    params = init_params(pkey)
    prepped = prepare_params(params)          # one-time weight prep (hoisted out of forward)

    B = 2
    x = jax.random.normal(xkey, (B, C_IN, H, W), jnp.float32)   # NCHW

    forward = jax.jit(knight_dqn_forward)
    out = jax.block_until_ready(forward(x, prepped))

    ref = jax.block_until_ready(reference_forward(x, params))
    assert out.shape == (B, N_ACTIONS)
    # bf16 matmul boundary -> slightly looser tolerance than pure f32.
    np.testing.assert_allclose(np.asarray(out), np.asarray(ref), rtol=2e-2, atol=2e-2)

    print("KERNEL_OK")
</pallas_src>

<mosaic_0001>
module attributes {stable_mosaic.version = 11 : i64} {
  func.func @knight_dqn_kernel(%arg0: i32, %arg1: memref<8x3xf32, #tpu.memory_space<smem>>, %arg2: memref<8xf32, #tpu.memory_space<smem>>, %arg3: memref<3x8x64xf32, #tpu.memory_space<vmem>>, %arg4: memref<512x64xbf16, #tpu.memory_space<vmem>>, %arg5: memref<1x64xf32, #tpu.memory_space<vmem>>, %arg6: memref<64x128xbf16, #tpu.memory_space<vmem>>, %arg7: memref<1x128xf32, #tpu.memory_space<vmem>>, %arg8: memref<8x128xf32, #tpu.memory_space<vmem>>) attributes {dimension_semantics = [#tpu.dimension_semantics<parallel>], iteration_bounds = array<i64: 1>, scalar_prefetch = 0 : i64, scratch_operands = 0 : i64, tpu.core_type = #tpu.core_type<tc>, window_params = [{transform_indices = @transform_0, window_bounds = array<i64: 8, 3>}, {transform_indices = @transform_1, window_bounds = array<i64: 8>}, {transform_indices = @transform_2, window_bounds = array<i64: 3, 8, 64>}, {pipeline_mode = #tpu.pipeline_mode<synchronous>, transform_indices = @transform_3, window_bounds = array<i64: 512, 64>}, {pipeline_mode = #tpu.pipeline_mode<synchronous>, transform_indices = @transform_4, window_bounds = array<i64: 1, 64>}, {pipeline_mode = #tpu.pipeline_mode<synchronous>, transform_indices = @transform_5, window_bounds = array<i64: 64, 128>}, {pipeline_mode = #tpu.pipeline_mode<synchronous>, transform_indices = @transform_6, window_bounds = array<i64: 1, 128>}, {transform_indices = @transform_7, window_bounds = array<i64: 8, 128>}]} {
    %c0 = arith.constant 0 : index
    %c0_0 = arith.constant 0 : index
    %c0_1 = arith.constant 0 : index
    %0 = vector.load %arg3[%c0, %c0_0, %c0_1] : memref<3x8x64xf32, #tpu.memory_space<vmem>>, vector<1x8x64xf32>
    %1 = vector.shape_cast %0 : vector<1x8x64xf32> to vector<8x64xf32>
    %c1 = arith.constant 1 : index
    %c0_2 = arith.constant 0 : index
    %c0_3 = arith.constant 0 : index
    %2 = vector.load %arg3[%c1, %c0_2, %c0_3] : memref<3x8x64xf32, #tpu.memory_space<vmem>>, vector<1x8x64xf32>
    %3 = vector.shape_cast %2 : vector<1x8x64xf32> to vector<8x64xf32>
    %c2 = arith.constant 2 : index
    %c0_4 = arith.constant 0 : index
    %c0_5 = arith.constant 0 : index
    %4 = vector.load %arg3[%c2, %c0_4, %c0_5] : memref<3x8x64xf32, #tpu.memory_space<vmem>>, vector<1x8x64xf32>
    %5 = vector.shape_cast %4 : vector<1x8x64xf32> to vector<8x64xf32>
    %c0_6 = arith.constant 0 : index
    %6 = memref.load %arg2[%c0_6] : memref<8xf32, #tpu.memory_space<smem>>
    %c0_7 = arith.constant 0 : index
    %c0_8 = arith.constant 0 : index
    %7 = memref.load %arg1[%c0_7, %c0_8] : memref<8x3xf32, #tpu.memory_space<smem>>
    %8 = vector.broadcast %7 : f32 to vector<8x64xf32>
    %9 = arith.mulf %8, %1 : vector<8x64xf32>
    %10 = vector.broadcast %6 : f32 to vector<8x64xf32>
    %11 = arith.addf %10, %9 : vector<8x64xf32>
    %c0_9 = arith.constant 0 : index
    %c1_10 = arith.constant 1 : index
    %12 = memref.load %arg1[%c0_9, %c1_10] : memref<8x3xf32, #tpu.memory_space<smem>>
    %13 = vector.broadcast %12 : f32 to vector<8x64xf32>
    %14 = arith.mulf %13, %3 : vector<8x64xf32>
    %15 = arith.addf %11, %14 : vector<8x64xf32>
    %c0_11 = arith.constant 0 : index
    %c2_12 = arith.constant 2 : index
    %16 = memref.load %arg1[%c0_11, %c2_12] : memref<8x3xf32, #tpu.memory_space<smem>>
    %17 = vector.broadcast %16 : f32 to vector<8x64xf32>
    %18 = arith.mulf %17, %5 : vector<8x64xf32>
    %19 = arith.addf %15, %18 : vector<8x64xf32>
    %cst = arith.constant 0.000000e+00 : f32
    %20 = vector.broadcast %cst : f32 to vector<8x64xf32>
    %21 = arith.maximumf %19, %20 : vector<8x64xf32>
    %c1_13 = arith.constant 1 : index
    %22 = memref.load %arg2[%c1_13] : memref<8xf32, #tpu.memory_space<smem>>
    %c1_14 = arith.constant 1 : index
    %c0_15 = arith.constant 0 : index
    %23 = memref.load %arg1[%c1_14, %c0_15] : memref<8x3xf32, #tpu.memory_space<smem>>
    %24 = vector.broadcast %23 : f32 to vector<8x64xf32>
    %25 = arith.mulf %24, %1 : vector<8x64xf32>
    %26 = vector.broadcast %22 : f32 to vector<8x64xf32>
    %27 = arith.addf %26, %25 : vector<8x64xf32>
    %c1_16 = arith.constant 1 : index
    %c1_17 = arith.constant 1 : index
    %28 = memref.load %arg1[%c1_16, %c1_17] : memref<8x3xf32, #tpu.memory_space<smem>>
    %29 = vector.broadcast %28 : f32 to vector<8x64xf32>
    %30 = arith.mulf %29, %3 : vector<8x64xf32>
    %31 = arith.addf %27, %30 : vector<8x64xf32>
    %c1_18 = arith.constant 1 : index
    %c2_19 = arith.constant 2 : index
    %32 = memref.load %arg1[%c1_18, %c2_19] : memref<8x3xf32, #tpu.memory_space<smem>>
    %33 = vector.broadcast %32 : f32 to vector<8x64xf32>
    %34 = arith.mulf %33, %5 : vector<8x64xf32>
    %35 = arith.addf %31, %34 : vector<8x64xf32>
    %cst_20 = arith.constant 0.000000e+00 : f32
    %36 = vector.broadcast %cst_20 : f32 to vector<8x64xf32>
    %37 = arith.maximumf %35, %36 : vector<8x64xf32>
    %c2_21 = arith.constant 2 : index
    %38 = memref.load %arg2[%c2_21] : memref<8xf32, #tpu.memory_space<smem>>
    %c2_22 = arith.constant 2 : index
    %c0_23 = arith.constant 0 : index
    %39 = memref.load %arg1[%c2_22, %c0_23] : memref<8x3xf32, #tpu.memory_space<smem>>
    %40 = vector.broadcast %39 : f32 to vector<8x64xf32>
    %41 = arith.mulf %40, %1 : vector<8x64xf32>
    %42 = vector.broadcast %38 : f32 to vector<8x64xf32>
    %43 = arith.addf %42, %41 : vector<8x64xf32>
    %c2_24 = arith.constant 2 : index
    %c1_25 = arith.constant 1 : index
    %44 = memref.load %arg1[%c2_24, %c1_25] : memref<8x3xf32, #tpu.memory_space<smem>>
    %45 = vector.broadcast %44 : f32 to vector<8x64xf32>
    %46 = arith.mulf %45, %3 : vector<8x64xf32>
    %47 = arith.addf %43, %46 : vector<8x64xf32>
    %c2_26 = arith.constant 2 : index
    %c2_27 = arith.constant 2 : index
    %48 = memref.load %arg1[%c2_26, %c2_27] : memref<8x3xf32, #tpu.memory_space<smem>>
    %49 = vector.broadcast %48 : f32 to vector<8x64xf32>
    %50 = arith.mulf %49, %5 : vector<8x64xf32>
    %51 = arith.addf %47, %50 : vector<8x64xf32>
    %cst_28 = arith.constant 0.000000e+00 : f32
    %52 = vector.broadcast %cst_28 : f32 to vector<8x64xf32>
    %53 = arith.maximumf %51, %52 : vector<8x64xf32>
    %c3 = arith.constant 3 : index
    %54 = memref.load %arg2[%c3] : memref<8xf32, #tpu.memory_space<smem>>
    %c3_29 = arith.constant 3 : index
    %c0_30 = arith.constant 0 : index
    %55 = memref.load %arg1[%c3_29, %c0_30] : memref<8x3xf32, #tpu.memory_space<smem>>
    %56 = vector.broadcast %55 : f32 to vector<8x64xf32>
    %57 = arith.mulf %56, %1 : vector<8x64xf32>
    %58 = vector.broadcast %54 : f32 to vector<8x64xf32>
    %59 = arith.addf %58, %57 : vector<8x64xf32>
    %c3_31 = arith.constant 3 : index
    %c1_32 = arith.constant 1 : index
    %60 = memref.load %arg1[%c3_31, %c1_32] : memref<8x3xf32, #tpu.memory_space<smem>>
    %61 = vector.broadcast %60 : f32 to vector<8x64xf32>
    %62 = arith.mulf %61, %3 : vector<8x64xf32>
    %63 = arith.addf %59, %62 : vector<8x64xf32>
    %c3_33 = arith.constant 3 : index
    %c2_34 = arith.constant 2 : index
    %64 = memref.load %arg1[%c3_33, %c2_34] : memref<8x3xf32, #tpu.memory_space<smem>>
    %65 = vector.broadcast %64 : f32 to vector<8x64xf32>
    %66 = arith.mulf %65, %5 : vector<8x64xf32>
    %67 = arith.addf %63, %66 : vector<8x64xf32>
    %cst_35 = arith.constant 0.000000e+00 : f32
    %68 = vector.broadcast %cst_35 : f32 to vector<8x64xf32>
    %69 = arith.maximumf %67, %68 : vector<8x64xf32>
    %c4 = arith.constant 4 : index
    %70 = memref.load %arg2[%c4] : memref<8xf32, #tpu.memory_space<smem>>
    %c4_36 = arith.constant 4 : index
    %c0_37 = arith.constant 0 : index
    %71 = memref.load %arg1[%c4_36, %c0_37] : memref<8x3xf32, #tpu.memory_space<smem>>
    %72 = vector.broadcast %71 : f32 to vector<8x64xf32>
    %73 = arith.mulf %72, %1 : vector<8x64xf32>
    %74 = vector.broadcast %70 : f32 to vector<8x64xf32>
    %75 = arith.addf %74, %73 : vector<8x64xf32>
    %c4_38 = arith.constant 4 : index
    %c1_39 = arith.constant 1 : index
    %76 = memref.load %arg1[%c4_38, %c1_39] : memref<8x3xf32, #tpu.memory_space<smem>>
    %77 = vector.broadcast %76 : f32 to vector<8x64xf32>
    %78 = arith.mulf %77, %3 : vector<8x64xf32>
    %79 = arith.addf %75, %78 : vector<8x64xf32>
    %c4_40 = arith.constant 4 : index
    %c2_41 = arith.constant 2 : index
    %80 = memref.load %arg1[%c4_40, %c2_41] : memref<8x3xf32, #tpu.memory_space<smem>>
    %81 = vector.broadcast %80 : f32 to vector<8x64xf32>
    %82 = arith.mulf %81, %5 : vector<8x64xf32>
    %83 = arith.addf %79, %82 : vector<8x64xf32>
    %cst_42 = arith.constant 0.000000e+00 : f32
    %84 = vector.broadcast %cst_42 : f32 to vector<8x64xf32>
    %85 = arith.maximumf %83, %84 : vector<8x64xf32>
    %c5 = arith.constant 5 : index
    %86 = memref.load %arg2[%c5] : memref<8xf32, #tpu.memory_space<smem>>
    %c5_43 = arith.constant 5 : index
    %c0_44 = arith.constant 0 : index
    %87 = memref.load %arg1[%c5_43, %c0_44] : memref<8x3xf32, #tpu.memory_space<smem>>
    %88 = vector.broadcast %87 : f32 to vector<8x64xf32>
    %89 = arith.mulf %88, %1 : vector<8x64xf32>
    %90 = vector.broadcast %86 : f32 to vector<8x64xf32>
    %91 = arith.addf %90, %89 : vector<8x64xf32>
    %c5_45 = arith.constant 5 : index
    %c1_46 = arith.constant 1 : index
    %92 = memref.load %arg1[%c5_45, %c1_46] : memref<8x3xf32, #tpu.memory_space<smem>>
    %93 = vector.broadcast %92 : f32 to vector<8x64xf32>
    %94 = arith.mulf %93, %3 : vector<8x64xf32>
    %95 = arith.addf %91, %94 : vector<8x64xf32>
    %c5_47 = arith.constant 5 : index
    %c2_48 = arith.constant 2 : index
    %96 = memref.load %arg1[%c5_47, %c2_48] : memref<8x3xf32, #tpu.memory_space<smem>>
    %97 = vector.broadcast %96 : f32 to vector<8x64xf32>
    %98 = arith.mulf %97, %5 : vector<8x64xf32>
    %99 = arith.addf %95, %98 : vector<8x64xf32>
    %cst_49 = arith.constant 0.000000e+00 : f32
    %100 = vector.broadcast %cst_49 : f32 to vector<8x64xf32>
    %101 = arith.maximumf %99, %100 : vector<8x64xf32>
    %c6 = arith.constant 6 : index
    %102 = memref.load %arg2[%c6] : memref<8xf32, #tpu.memory_space<smem>>
    %c6_50 = arith.constant 6 : index
    %c0_51 = arith.constant 0 : index
    %103 = memref.load %arg1[%c6_50, %c0_51] : memref<8x3xf32, #tpu.memory_space<smem>>
    %104 = vector.broadcast %103 : f32 to vector<8x64xf32>
    %105 = arith.mulf %104, %1 : vector<8x64xf32>
    %106 = vector.broadcast %102 : f32 to vector<8x64xf32>
    %107 = arith.addf %106, %105 : vector<8x64xf32>
    %c6_52 = arith.constant 6 : index
    %c1_53 = arith.constant 1 : index
    %108 = memref.load %arg1[%c6_52, %c1_53] : memref<8x3xf32, #tpu.memory_space<smem>>
    %109 = vector.broadcast %108 : f32 to vector<8x64xf32>
    %110 = arith.mulf %109, %3 : vector<8x64xf32>
    %111 = arith.addf %107, %110 : vector<8x64xf32>
    %c6_54 = arith.constant 6 : index
    %c2_55 = arith.constant 2 : index
    %112 = memref.load %arg1[%c6_54, %c2_55] : memref<8x3xf32, #tpu.memory_space<smem>>
    %113 = vector.broadcast %112 : f32 to vector<8x64xf32>
    %114 = arith.mulf %113, %5 : vector<8x64xf32>
    %115 = arith.addf %111, %114 : vector<8x64xf32>
    %cst_56 = arith.constant 0.000000e+00 : f32
    %116 = vector.broadcast %cst_56 : f32 to vector<8x64xf32>
    %117 = arith.maximumf %115, %116 : vector<8x64xf32>
    %c7 = arith.constant 7 : index
    %118 = memref.load %arg2[%c7] : memref<8xf32, #tpu.memory_space<smem>>
    %c7_57 = arith.constant 7 : index
    %c0_58 = arith.constant 0 : index
    %119 = memref.load %arg1[%c7_57, %c0_58] : memref<8x3xf32, #tpu.memory_space<smem>>
    %120 = vector.broadcast %119 : f32 to vector<8x64xf32>
    %121 = arith.mulf %120, %1 : vector<8x64xf32>
    %122 = vector.broadcast %118 : f32 to vector<8x64xf32>
    %123 = arith.addf %122, %121 : vector<8x64xf32>
    %c7_59 = arith.constant 7 : index
    %c1_60 = arith.constant 1 : index
    %124 = memref.load %arg1[%c7_59, %c1_60] : memref<8x3xf32, #tpu.memory_space<smem>>
    %125 = vector.broadcast %124 : f32 to vector<8x64xf32>
    %126 = arith.mulf %125, %3 : vector<8x64xf32>
    %127 = arith.addf %123, %126 : vector<8x64xf32>
    %c7_61 = arith.constant 7 : index
    %c2_62 = arith.constant 2 : index
    %128 = memref.load %arg1[%c7_61, %c2_62] : memref<8x3xf32, #tpu.memory_space<smem>>
    %129 = vector.broadcast %128 : f32 to vector<8x64xf32>
    %130 = arith.mulf %129, %5 : vector<8x64xf32>
    %131 = arith.addf %127, %130 : vector<8x64xf32>
    %cst_63 = arith.constant 0.000000e+00 : f32
    %132 = vector.broadcast %cst_63 : f32 to vector<8x64xf32>
    %133 = arith.maximumf %131, %132 : vector<8x64xf32>
    %134 = tpu.concatenate %21, %37, %53, %69, %85, %101, %117, %133 in 1 : vector<8x64xf32>, vector<8x64xf32>, vector<8x64xf32>, vector<8x64xf32>, vector<8x64xf32>, vector<8x64xf32>, vector<8x64xf32>, vector<8x64xf32> -> vector<8x512xf32>
    %135 = arith.truncf %134 : vector<8x512xf32> to vector<8x512xbf16>
    %c0_64 = arith.constant 0 : index
    %c0_65 = arith.constant 0 : index
    %136 = vector.load %arg4[%c0_64, %c0_65] : memref<512x64xbf16, #tpu.memory_space<vmem>>, vector<512x64xbf16>
    %cst_66 = arith.constant dense<0.000000e+00> : vector<8x64xf32>
    %137 = tpu.matmul %135, %136, %cst_66 {dimension_numbers = #tpu.dot_dimension_numbers<[1], [0], [0], [1], [0, 0, 1, 1], [], []>} : vector<8x512xbf16>, vector<512x64xbf16>, vector<8x64xf32> -> vector<8x64xf32>
    %c0_67 = arith.constant 0 : index
    %c0_68 = arith.constant 0 : index
    %138 = vector.load %arg5[%c0_67, %c0_68] : memref<1x64xf32, #tpu.memory_space<vmem>>, vector<1x64xf32>
    %139 = vector.broadcast %138 : vector<1x64xf32> to vector<8x64xf32>
    %140 = arith.addf %137, %139 : vector<8x64xf32>
    %cst_69 = arith.constant 0.000000e+00 : f32
    %141 = vector.broadcast %cst_69 : f32 to vector<8x64xf32>
    %142 = arith.maximumf %140, %141 : vector<8x64xf32>
    %143 = arith.truncf %142 : vector<8x64xf32> to vector<8x64xbf16>
    %c0_70 = arith.constant 0 : index
    %c0_71 = arith.constant 0 : index
    %144 = vector.load %arg6[%c0_70, %c0_71] : memref<64x128xbf16, #tpu.memory_space<vmem>>, vector<64x128xbf16>
    %cst_72 = arith.constant dense<0.000000e+00> : vector<8x128xf32>
    %145 = tpu.matmul %143, %144, %cst_72 {dimension_numbers = #tpu.dot_dimension_numbers<[1], [0], [0], [1], [0, 0, 1, 1], [], []>} : vector<8x64xbf16>, vector<64x128xbf16>, vector<8x128xf32> -> vector<8x128xf32>
    %c0_73 = arith.constant 0 : index
    %c0_74 = arith.constant 0 : index
    %146 = vector.load %arg7[%c0_73, %c0_74] : memref<1x128xf32, #tpu.memory_space<vmem>>, vector<1x128xf32>
    %147 = vector.broadcast %146 : vector<1x128xf32> to vector<8x128xf32>
    %148 = arith.addf %145, %147 : vector<8x128xf32>
    %c0_75 = arith.constant 0 : index
    %c0_76 = arith.constant 0 : index
    %149 = vector.load %arg8[%c0_75, %c0_76] : memref<8x128xf32, #tpu.memory_space<vmem>>, vector<8x128xf32>
    tpu.vector_store %arg8[%c0_75, %c0_76], %148 {strides = array<i32>} : memref<8x128xf32, #tpu.memory_space<vmem>>, vector<8x128xf32>,
    return
  }
  func.func @transform_0(%arg0: i32) -> (i32, i32) {
    %c0_i32 = arith.constant 0 : i32
    %c0_i32_0 = arith.constant 0 : i32
    %c0_i32_1 = arith.constant 0 : i32
    return %c0_i32, %c0_i32_0 : i32, i32
  }
  func.func @transform_1(%arg0: i32) -> i32 {
    %c0_i32 = arith.constant 0 : i32
    %c0_i32_0 = arith.constant 0 : i32
    return %c0_i32 : i32
  }
  func.func @transform_2(%arg0: i32) -> (i32, i32, i32) {
    %c0_i32 = arith.constant 0 : i32
    %c0_i32_0 = arith.constant 0 : i32
    %c0_i32_1 = arith.constant 0 : i32
    return %c0_i32, %arg0, %c0_i32_0 : i32, i32, i32
  }
  func.func @transform_3(%arg0: i32) -> (i32, i32) {
    %c0_i32 = arith.constant 0 : i32
    %c0_i32_0 = arith.constant 0 : i32
    %c0_i32_1 = arith.constant 0 : i32
    return %c0_i32, %c0_i32_0 : i32, i32
  }
  func.func @transform_4(%arg0: i32) -> (i32, i32) {
    %c0_i32 = arith.constant 0 : i32
    %c0_i32_0 = arith.constant 0 : i32
    %c0_i32_1 = arith.constant 0 : i32
    return %c0_i32, %c0_i32_0 : i32, i32
  }
  func.func @transform_5(%arg0: i32) -> (i32, i32) {
    %c0_i32 = arith.constant 0 : i32
    %c0_i32_0 = arith.constant 0 : i32
    %c0_i32_1 = arith.constant 0 : i32
    return %c0_i32, %c0_i32_0 : i32, i32
  }
  func.func @transform_6(%arg0: i32) -> (i32, i32) {
    %c0_i32 = arith.constant 0 : i32
    %c0_i32_0 = arith.constant 0 : i32
    %c0_i32_1 = arith.constant 0 : i32
    return %c0_i32, %c0_i32_0 : i32, i32
  }
  func.func @transform_7(%arg0: i32) -> (i32, i32) {
    %c0_i32 = arith.constant 0 : i32
    %c0_i32_0 = arith.constant 0 : i32
    return %arg0, %c0_i32 : i32, i32
  }
}

</mosaic_0001>

<bundles_post_ra>
// kernel: knight_dqn_forward.1
= control target key start
LH: loop header
LB: loop body
LE: loop exit
PB: predicated region body
PF: predicated region fallthrough
CT: control target
= control target key end

     0   :  { %12 = vsyncpa [#allocation3], 0  ;;  %s1100_s0 = inlined_call_operand.vmem [shape: f32[8,3], index: 0, kind: input, shape index: {}]   ;;  %s1101_s1 = inlined_call_operand.vmem [shape: f32[8], index: 1, kind: input, shape index: {}]   ;;  %s1102_s2 = inlined_call_operand.vmem [shape: f32[3,8,64], index: 2, kind: input, shape index: {}]   ;;  %s1103_s3 = inlined_call_operand.vmem [shape: bf16[512,64], index: 3, kind: input, shape index: {}]   ;;  %s1104_s4 = inlined_call_operand.vmem [shape: f32[1,64], index: 4, kind: input, shape index: {}]   ;;  %s1105_s5 = inlined_call_operand.vmem [shape: bf16[64,128], index: 5, kind: input, shape index: {}]   ;;  %s1106_s6 = inlined_call_operand.vmem [shape: f32[1,128], index: 6, kind: input, shape index: {}]   ;;  %s1107_s7 = inlined_call_operand.vmem [shape: f32[8,128], index: 7, kind: output, shape index: {}]  }
   0x1   :  { %s20_s26 = sshll.u32 %s1100_s0, 4  ;;  %s21_s26 = int_to_ptr.vmem [resolvable:$true] %s20_s26 }
   0x2   :  { %13 = vsyncpa [#allocation5], 0  ;;  %s30_s29 = sshll.u32 %s1101_s1, 4  ;;  %s819_s30 = scalar_lea.vmem %s21_s26, 128  ;;  %s31_s29 = int_to_ptr.vmem [resolvable:$true] %s30_s29 }
   0x3   :  { %p820_p0 = scmp.ne.s32.totalorder %s21_s26, %s819_s30  ;;  %p824_p1 = scmp.lt.s32.totalorder %s21_s26, %s21_s26 }
   0x4   :  { %p825_p2 = scmp.lt.s32.totalorder %s819_s30, %s819_s30 }
   0x6   :  { %p826_p3 = por %p825_p2, %p824_p1 }
   0x8   :  { %p827_p4 = pnand %p826_p3, %p820_p0 }
   0xa   :  { %830 = shalt.err (!%p827_p4)
}
   0xb   :  { %s847_s8 = smov [#allocation2]   ;;  %s831_s9 = scalar_lea.vmem %s31_s29, 16 }
   0xc   :  { %23 = dma.vmem_to_smem %s21_s26, 128, %s847_s8, [#allocation3]  }
   0xd   :  { %p832_p5 = scmp.ne.s32.totalorder %s31_s29, %s831_s9  ;;  %p836_p6 = scmp.lt.s32.totalorder %s31_s29, %s31_s29 }
   0xe   :  { %p837_p7 = scmp.lt.s32.totalorder %s831_s9, %s831_s9 }
  0x10   :  { %p838_p8 = por %p837_p7, %p836_p6 }
  0x12   :  { %p839_p9 = pnand %p838_p8, %p832_p5 }
  0x14   :  { %842 = shalt.err (!%p839_p9)
}
  0x15   :  { %s848_s0 = smov [#allocation4]  }
  0x16   :  { %33 = dma.vmem_to_smem %s31_s29, 16, %s848_s0, [#allocation5]  }
  0x17   :  { %843 = dma.done.wait [#allocation3], 128  }
  0x18   :  { %844 = vsyncadd [#allocation3], 4294967168 }
  0x19   :  { %845 = dma.done.wait [#allocation5], 16  }
  0x1a   :  { %846 = vsyncadd [#allocation5], 4294967280 }
  0x1b   :  { %50 = sfence }
  0x1c   :  { %s898_s1 = sld [smem:[#allocation4 + $0x1]]  ;;  %v783_v0 = vld [vmem:[%s1103_s3 + $0x78] sm:$0xff]   ;;  %v909_v2 = vld [vmem:[%s1102_s2] sm:$0xff]  ;;  %v914_v3 = vld [vmem:[%s1102_s2 + $0x8] sm:$0xff]  ;;  %s849_s19 = smov 64   ;;  %vm193_vm0 = vcmask 523264  }
  0x1d   :  { %s641_s10 = sld [smem:[#allocation2 + $0x80]]  ;;  %v784_v1 = vld [vmem:[%s1103_s3 + $0x38] sm:$0xff]   ;;  %707 = vmatprep.subr.bf16.mxu0 %v783_v0  ;;  %v785_v4 = vld [vmem:[%s1103_s3 + $0x70] sm:$0xff]   ;;  %v789_v15 = vld [vmem:[%s1103_s3 + $0x68] sm:$0xff]   ;;  %vm851_vm1 = vmmov 0  }
  0x1e   :  { %s642_s11 = sld [smem:[#allocation2 + $0x81]]  ;;  %v786_v5 = vld [vmem:[%s1103_s3 + $0xf8] sm:$0xff]   ;;  %v927_v6 = vld [vmem:[%s1102_s2 + $0x10] sm:$0xff]  ;;  %708 = vmatpush3.bf16.msra.mxu0 %v784_v1  ;;  %v791_v24 = vld [vmem:[%s1103_s3 + $0x28] sm:$0xff]  }
  0x1f   :  { %s643_s18 = sld [smem:[#allocation2 + $0x82]]  ;;  %709 = vmatprep.subr.bf16.mxu0 %v785_v4  ;;  %729 = vmatprep.subr.bf16.mxu1 %v786_v5  ;;  %v787_v9 = vld [vmem:[%s1103_s3 + $0x30] sm:$0xff]   ;;  %v788_v10 = vld [vmem:[%s1103_s3 + $0xb8] sm:$0xff]   ;;  %v793_v31 = vld [vmem:[%s1103_s3 + $0x60] sm:$0xff]  }
  0x20   :  { %s916_s21 = sld [smem:[#allocation4 + $0x3]]  ;;  %730 = vmatpush3.bf16.msra.mxu1 %v788_v10  ;;  %v790_v16 = vld [vmem:[%s1103_s3 + $0xf0] sm:$0xff]   ;;  %v794_v32 = vld [vmem:[%s1103_s3 + $0xe8] sm:$0xff]   ;;  %v795_v38 = vld [vmem:[%s1103_s3 + $0x20] sm:$0xff]  }
  0x21   :  { %s649_s28 = sld [smem:[#allocation2 + $0x180]]  ;;  %731 = vmatprep.subr.bf16.mxu1 %v790_v16  ;;  %v792_v25 = vld [vmem:[%s1103_s3 + $0xb0] sm:$0xff]   ;;  %v796_v42 = vld [vmem:[%s1103_s3 + $0xa8] sm:$0xff]   ;;  %v797_v47 = vld [vmem:[%s1103_s3 + $0x58] sm:$0xff]  }
  0x22   :  { %v76_v7 = vstv %s898_s1  ;;  %s930_s29 = sld [smem:[#allocation2 + $0x181]]  ;;  %710 = vmatpush3.bf16.msra.mxu0 %v787_v9  ;;  %v798_v49 = vld [vmem:[%s1103_s3 + $0xe0] sm:$0xff]   ;;  %v799_v54 = vld [vmem:[%s1103_s3 + $0x18] sm:$0xff]   ;;  %v801_v62 = vld [vmem:[%s1103_s3 + $0x50] sm:$0xff]  }
  0x23   :  { %v74_v8 = vstv %s641_s10  ;;  %s932_s30 = sld [smem:[#allocation2 + $0x182]]  ;;  %711 = vmatprep.subr.bf16.mxu0 %v789_v15  ;;  %v800_v57 = vld [vmem:[%s1103_s3 + $0xa0] sm:$0xff]   ;;  %v802_v63 = vld [vmem:[%s1103_s3 + $0xd8] sm:$0xff]   ;;  %v803_v1 = vld [vmem:[%s1103_s3 + $0x10] sm:$0xff]  }
  0x24   :  { %v75_v11 = vmul.f32 %v74_v8, %v909_v2  ;;  %v79_v12 = vstv %s642_s11  ;;  %s941_s2 = sld [smem:[#allocation4 + $0x5]]  ;;  %732 = vmatpush3.bf16.msra.mxu1 %v792_v25  ;;  %v804_v4 = vld [vmem:[%s1103_s3 + $0x98] sm:$0xff]   ;;  %v805_v8 = vld [vmem:[%s1103_s3 + $0x48] sm:$0xff]   ;;  %v806_v9 = vld [vmem:[%s1103_s3 + $0xd0] sm:$0xff]  }
  0x25   :  { %v80_v13 = vmul.f32 %v914_v3, %v79_v12  ;;  %v83_v14 = vstv %s643_s18  ;;  %s944_s1 = sld [smem:[#allocation2 + $0x280]]  ;;  %733 = vmatprep.subr.bf16.mxu1 %v794_v32  ;;  %v808_v12 = vld [vmem:[%s1103_s3 + $0x90] sm:$0xff]   ;;  %v810_v15 = vld [vmem:[%s1103_s3 + $0xc8] sm:$0xff]   ;;  %v811_v16 = vld [vmem:[%s1103_s3] sm:$0xff]  }
  0x26   :  { %v77_v17 = vadd.f32 %v76_v7, %v75_v11  ;;  %v84_v18 = vmul.f32 %v927_v6, %v83_v14  ;;  %s953_s11 = sld [smem:[#allocation2 + $0x281]]  ;;  %v106_v20 = vstv %s916_s21  ;;  %712 = vmatpush3.bf16.msra.mxu0 %v791_v24  ;;  %v807_v11 = vld [vmem:[%s1103_s3 + $0x8] sm:$0xff]   ;;  %v809_v14 = vld [vmem:[%s1103_s3 + $0x40] sm:$0xff]  }
  0x27   :  { %v104_v19 = vstv %s649_s28  ;;  %s956_s16 = sld [smem:[#allocation2 + $0x282]]  ;;  %713 = vmatprep.subr.bf16.mxu0 %v793_v31 }
  0x28   :  { %v81_v21 = vadd.f32 %v80_v13, %v77_v17  ;;  %v105_v22 = vmul.f32 %v104_v19, %v909_v2  ;;  %v109_v23 = vstv %s930_s29  ;;  %s960_s17 = sld [smem:[#allocation4 + $0x7]]  ;;  %734 = vmatpush3.bf16.msra.mxu1 %v796_v42  ;;  %v812_v17 = vld [vmem:[%s1103_s3 + $0x88] sm:$0xff]   ;;  %v814_v19 = vld [vmem:[%s1103_s3 + $0x80] sm:$0xff]  }
  0x29   :  { %v110_v26 = vmul.f32 %v914_v3, %v109_v23  ;;  %v113_v27 = vstv %s932_s30  ;;  %s970_s21 = sld [smem:[#allocation2 + $0x380]]  ;;  %735 = vmatprep.subr.bf16.mxu1 %v798_v49 }
  0x2a   :  { %v85_v28 = vadd.f32 %v84_v18, %v81_v21  ;;  %v107_v29 = vadd.f32 %v106_v20, %v105_v22  ;;  %v114_v30 = vmul.f32 %v927_v6, %v113_v27  ;;  %s973_s23 = sld [smem:[#allocation2 + $0x381]]  ;;  %v136_v34 = vstv %s941_s2  ;;  %714 = vmatpush3.bf16.msra.mxu0 %v795_v38  ;;  %v813_v18 = vld [vmem:[%s1103_s3 + $0xc0] sm:$0xff]  }
  0x2b   :  { %v134_v33 = vstv %s944_s1  ;;  %s983_s28 = sld [smem:[#allocation2 + $0x382]]  ;;  %715 = vmatprep.subr.bf16.mxu0 %v797_v47  ;;  %v850_v20 = vmov 0.0  }
  0x2c   :  { %v111_v35 = vadd.f32 %v110_v26, %v107_v29  ;;  %v135_v36 = vmul.f32 %v134_v33, %v909_v2  ;;  %v139_v37 = vstv %s953_s11  ;;  %v86_v39 = vmax.f32 %v85_v28, 0.0  ;;  %736 = vmatpush3.bf16.msra.mxu1 %v800_v57  ;;  %s644_s15 = sld [smem:[#allocation4 + $0x2]] }
  0x2d   :  { %v140_v40 = vmul.f32 %v914_v3, %v139_v37  ;;  %v143_v41 = vstv %s956_s16  ;;  %737 = vmatprep.subr.bf16.mxu1 %v802_v63  ;;  %s645_s11 = sld [smem:[#allocation2 + $0x100]] }
  0x2e   :  { %v115_v43 = vadd.f32 %v114_v30, %v111_v35  ;;  %v137_v44 = vadd.f32 %v136_v34, %v135_v36  ;;  %v144_v45 = vmul.f32 %v927_v6, %v143_v41  ;;  %v166_v46 = vstv %s960_s17  ;;  %716 = vmatpush3.bf16.msra.mxu0 %v799_v54  ;;  %s646_s20 = sld [smem:[#allocation2 + $0x101]] }
  0x2f   :  { %v164_v48 = vstv %s970_s21  ;;  %717 = vmatprep.subr.bf16.mxu0 %v801_v62  ;;  %s647_s22 = sld [smem:[#allocation2 + $0x102]] }
  0x30   :  { %v116_v50 = vmax.f32 %v115_v43, 0.0  ;;  %v141_v51 = vadd.f32 %v140_v40, %v137_v44  ;;  %v165_v52 = vmul.f32 %v164_v48, %v909_v2  ;;  %v169_v53 = vstv %s973_s23  ;;  %738 = vmatpush3.bf16.msra.mxu1 %v804_v4  ;;  %s57_s21 = sld [smem:[#allocation4]] }
  0x31   :  { %v170_v55 = vmul.f32 %v914_v3, %v169_v53  ;;  %v173_v56 = vstv %s983_s28  ;;  %739 = vmatprep.subr.bf16.mxu1 %v806_v9  ;;  %s58_s23 = sld [smem:[#allocation2]] }
  0x32   :  { %v773_v58 = vpack.i.bf16 %v86_v39, %v116_v50  ;;  %v145_v59 = vadd.f32 %v144_v45, %v141_v51  ;;  %v167_v60 = vadd.f32 %v166_v46, %v165_v52  ;;  %v174_v61 = vmul.f32 %v927_v6, %v173_v56  ;;  %718 = vmatpush3.bf16.msra.mxu0 %v803_v1  ;;  %s638_s24 = sld [smem:[#allocation2 + $0x1]] }
  0x33   :  { %719 = vmatprep.subr.bf16.mxu0 %v805_v8  ;;  %v89_v21 = vstv %s645_s11  ;;  %v91_v22 = vstv %s644_s15  ;;  %s639_s25 = sld [smem:[#allocation2 + $0x2]] }
  0x34   :  { %774 = vrot.lane.b32.xlu0 %v773_v58, %s849_s19  ;;  %v171_v0 = vadd.f32 %v170_v55, %v167_v60  ;;  %v146_v5 = vmax.f32 %v145_v59, 0.0  ;;  %740 = vmatpush3.bf16.msra.mxu1 %v808_v12  ;;  %v90_v23 = vmul.f32 %v89_v21, %v909_v2  ;;  %v94_v24 = vstv %s646_s20  ;;  %s660_s26 = sld [smem:[#allocation4 + $0x6]] }
  0x35   :  { %741 = vmatprep.subr.bf16.mxu1 %v810_v15  ;;  %v95_v25 = vmul.f32 %v914_v3, %v94_v24  ;;  %v98_v26 = vstv %s647_s22  ;;  %s661_s3 = sld [smem:[#allocation2 + $0x300]]  ;;  %v815_v15 = vld [vmem:[%s1105_s5 + $0x18] sm:$0xff]  }
  0x36   :  { %v175_v7 = vadd.f32 %v174_v61, %v171_v0  ;;  %720 = vmatpush3.bf16.msra.mxu0 %v807_v11  ;;  %v92_v27 = vadd.f32 %v91_v22, %v90_v23  ;;  %v99_v28 = vmul.f32 %v927_v6, %v98_v26  ;;  %s662_s27 = sld [smem:[#allocation2 + $0x301]]  ;;  %v61_v30 = vstv %s57_s21 }
  0x37   :  { %721 = vmatprep.subr.bf16.mxu0 %v809_v14  ;;  %v59_v29 = vstv %s58_s23  ;;  %s663_s28 = sld [smem:[#allocation2 + $0x302]] }
  0x38   :  { %v176_v10 = vmax.f32 %v175_v7, 0.0  ;;  %742 = vmatpush3.bf16.msra.mxu1 %v812_v17  ;;  %v96_v31 = vadd.f32 %v95_v25, %v92_v27  ;;  %v60_v32 = vmul.f32 %v59_v29, %v909_v2  ;;  %v64_v33 = vstv %s638_s24  ;;  %s652_s29 = sld [smem:[#allocation4 + $0x4]]  ;;  %v817_v17 = vld [vmem:[%s1105_s5 + $0x8] sm:$0xff]   ;;  %v668_v25 = vld [vmem:[%s1104_s4] ss:$0 sm:$0xff] }
  0x39   :  { %743 = vmatprep.subr.bf16.mxu1 %v813_v18  ;;  %v65_v34 = vmul.f32 %v914_v3, %v64_v33  ;;  %v68_v35 = vstv %s639_s25  ;;  %s653_s30 = sld [smem:[#allocation2 + $0x200]]  ;;  %v818_v18 = vld [vmem:[%s1105_s5] sm:$0xff]  }
  0x3a   :  { %v778_v13 = vpack.i.bf16 %v146_v5, %v176_v10  ;;  %722 = vmatpush3.bf16.msra.mxu0 %v811_v16  ;;  %v100_v36 = vadd.f32 %v99_v28, %v96_v31  ;;  %v62_v37 = vadd.f32 %v61_v30, %v60_v32  ;;  %v69_v38 = vmul.f32 %v927_v6, %v68_v35  ;;  %s654_s8 = sld [smem:[#allocation2 + $0x201]]  ;;  %v816_v16 = vld [vmem:[%s1105_s5 + $0x10] sm:$0xff]  }
  0x3b   :  { %756 = vmatprep.subr.bf16.mxu0 %v850_v20  ;;  %v149_v39 = vstv %s661_s3  ;;  %v151_v40 = vstv %s660_s26  ;;  %s655_s9 = sld [smem:[#allocation2 + $0x202]] }
  0x3c   :  { %779 = vrot.lane.b32.xlu0 %v778_v13, %s849_s19  ;;  %744 = vmatpush3.bf16.msra.mxu1 %v814_v19  ;;  %v66_v41 = vadd.f32 %v65_v34, %v62_v37  ;;  %v150_v42 = vmul.f32 %v149_v39, %v909_v2  ;;  %v154_v43 = vstv %s662_s27  ;;  %v101_v61 = vmax.f32 %v100_v36, 0.0 }
  0x3d   :  { %v155_v44 = vmul.f32 %v914_v3, %v154_v43  ;;  %v158_v45 = vstv %s663_s28 }
  0x3e   :  { %v70_v46 = vadd.f32 %v69_v38, %v66_v41  ;;  %v152_v47 = vadd.f32 %v151_v40, %v150_v42  ;;  %v159_v48 = vmul.f32 %v927_v6, %v158_v45  ;;  %v121_v50 = vstv %s652_s29 }
  0x3f   :  { %v119_v49 = vstv %s653_s30 }
  0x40   :  { %v156_v51 = vadd.f32 %v155_v44, %v152_v47  ;;  %v120_v52 = vmul.f32 %v119_v49, %v909_v2  ;;  %v124_v53 = vstv %s654_s8  ;;  %v71_v62 = vmax.f32 %v70_v46, 0.0 }
  0x41   :  { %v125_v54 = vmul.f32 %v914_v3, %v124_v53  ;;  %v128_v55 = vstv %s655_s9 }
  0x42   :  { %v160_v56 = vadd.f32 %v159_v48, %v156_v51  ;;  %v122_v57 = vadd.f32 %v121_v50, %v120_v52  ;;  %v129_v58 = vmul.f32 %v927_v6, %v128_v55 }
  0x44   :  { %v126_v59 = vadd.f32 %v125_v54, %v122_v57  ;;  %v161_v3 = vmax.f32 %v160_v56, 0.0 }
  0x46   :  { %v130_v60 = vadd.f32 %v129_v58, %v126_v59 }
  0x48   :  { %v131_v8 = vmax.f32 %v130_v60, 0.0 }
  0xa6   :  { %v775_v63 = vpop.permute.xlu0 %774 }
  0xa7   :  { %v777_v0 = vunpack.i.h.bf16 %v775_v63  ;;  %v776_v1 = vunpack.i.l.bf16 %v775_v63 }
  0xa9   :  { %v195_v4 = vsel %vm193_vm0, %v101_v61, %v776_v1  ;;  %v194_v2 = vsel %vm193_vm0, %v71_v62, %v777_v0 }
  0xaa   :  { %v199_v5 = vpack.c.bf16 %v195_v4, %v195_v4  ;;  %v198_v7 = vpack.c.bf16 %v194_v2, %v194_v2 }
  0xac   :  { %497 = vmatprep.mubr.bf16.mxu0 %v199_v5 }
  0xad   :  { %498 = vmatmul.mubr.bf16.vlgmr.msra.gmra.mxu0 %v198_v7 }
  0xae   :  { %v780_v9 = vpop.permute.xlu0 %779  ;;  %757 = vmatpush3.bf16.msra.mxu0 %v815_v15  ;;  %764 = vmatprep.mubr.msk.bf16.mxu0 %vm851_vm1, %v850_v20 }
  0xaf   :  { %v782_v6 = vunpack.i.h.bf16 %v780_v9  ;;  %v781_v10 = vunpack.i.l.bf16 %v780_v9  ;;  %758 = vmatprep.subr.bf16.mxu0 %v850_v20 }
  0xb1   :  { %v197_v11 = vsel %vm193_vm0, %v161_v3, %v781_v10  ;;  %v196_v12 = vsel %vm193_vm0, %v131_v8, %v782_v6 }
  0xb2   :  { %v201_v13 = vpack.c.bf16 %v197_v11, %v197_v11  ;;  %v200_v14 = vpack.c.bf16 %v196_v12, %v196_v12  ;;  %759 = vmatpush3.bf16.msra.mxu0 %v816_v16 }
  0xb3   :  { %760 = vmatprep.subr.bf16.mxu0 %v850_v20 }
  0xb4   :  { %537 = vmatprep.mubr.bf16.mxu1 %v201_v13 }
  0xb5   :  { %538 = vmatmul.mubr.bf16.vlgmr.msra.gmra.mxu1 %v200_v14 }
  0xb6   :  { %761 = vmatpush3.bf16.msra.mxu0 %v817_v17 }
  0xb7   :  { %762 = vmatprep.subr.bf16.mxu0 %v850_v20  ;;  %v701_v20 = vld [vmem:[%s1106_s6] ss:$0 sm:$0xff] }
  0xba   :  { %763 = vmatpush3.bf16.msra.mxu0 %v818_v18 }
 0x16d   :  { %v723_v19 = vpop.f32.mrf.mxu0 }
 0x16f   :  { %v724_v21 = vpop.f32.mrf.mxu0 }
 0x170   :  { %v725_v24 = vadd.f32 %v724_v21, %v723_v19 }
 0x171   :  { %v726_v22 = vpop.f32.mrf.mxu0 }
 0x172   :  { %v500_v28 = vadd.f32 %v725_v24, %v668_v25 }
 0x173   :  { %v727_v23 = vpop.f32.mrf.mxu0 }
 0x175   :  { %v745_v26 = vpop.f32.mrf.mxu1 }
 0x177   :  { %v746_v27 = vpop.f32.mrf.mxu1 }
 0x178   :  { %v747_v29 = vadd.f32 %v746_v27, %v745_v26 }
 0x179   :  { %v748_v30 = vpop.f32.mrf.mxu1 }
 0x17a   :  { %v540_v31 = vadd.f32 %v747_v29, %v500_v28 }
 0x17b   :  { %v749_v32 = vpop.f32.mrf.mxu1 }
 0x17c   :  { %v545_v33 = vmax.f32 %v540_v31, 0.0 }
 0x17e   :  { %v546_v34 = vpack.c.bf16 %v545_v33, %v545_v33 }
 0x180   :  { %765 = vmatmul.mubr.msk.bf16.vlgmr.msra.gmra.mxu0 %vm193_vm0, %v546_v34 }
 0x240   :  { %v623_v35 = vpop.f32.mrf.mxu0 }
 0x241   :  { %v624_v36 = vadd.f32 %v701_v20, %v623_v35 }
 0x242   :  { %v766_v37 = vpop.f32.mrf.mxu0 }
 0x243   :  { %629 = vst [vmem:[%s1107_s7] sm:$0xff] %v624_v36 }
 0x244   :  { %v626_v38 = vpop.f32.mrf.mxu0 }
 0x246   :  { %v767_v39 = vpop.f32.mrf.mxu0 }
 0x247   :  { %634 = vsyncpa [#allocation3], 1 }
 0x248   :  { %635 = vsyncpa [#allocation5], 1 }

</bundles_post_ra>
